<compile_context>
chip_gen: v7x
topology: tpu7x:2x2x1
jax: 0.10.0
libtpu: 0.0.40
codegen_flags: <defaults>
</compile_context>

<pallas_src>
import functools

import jax
import jax.numpy as jnp
from jax.experimental import pallas as pl
from jax.experimental.pallas import tpu as pltpu


def _round_up(x, m):
    return (x + m - 1) // m * m


def _conv2d_kernel(x_ref, w_ref, b_ref, o_ref, *, W, Cin, KH, KW, Lout):
    """One image per grid step (transposed, fused im2col matmul).

    x_ref : (1, Cin, Lin)          flat NCHW image (spatial on lanes), zero-padded tail
    w_ref : (Cout, KH*KW*Cin)      matmul-ready weight, contraction ordered (kh, kw, cin)
    b_ref : (Cout, 1)              bias
    o_ref : (1, Cout, Lout)        flat output; column f = ho*W + wo (wo >= Wo is garbage)
    """
    # Build the im2col slab: each tap (kh, kw) is just a static lane shift of the
    # flat image by d = kh*W + kw (XLU work only; no strided-window reshapes).
    taps = []
    for kh in range(KH):
        for kw in range(KW):
            d = kh * W + kw                              # static offset
            taps.append(x_ref[0, :, pl.ds(d, Lout)])     # (Cin, Lout)
    slab = jnp.concatenate(taps, axis=0)                 # (KH*KW*Cin, Lout)

    # One MXU matmul with K = KH*KW*Cin, output lane-dense along the spatial axis.
    out = jnp.dot(w_ref[...], slab, preferred_element_type=jnp.float32)  # (Cout, Lout)
    out = out + b_ref[...]                               # (Cout, 1) broadcast over lanes
    o_ref[0] = out.astype(o_ref.dtype)


def first_conv_layer(x_nchw, weight_oihw, bias):
    """Forward of FirstConvLayer: y = Conv2d(x), stride=1, padding=0.

    x_nchw     : (N, Cin, H, W)
    weight_oihw: (Cout, Cin, KH, KW)   (PyTorch layout)
    bias       : (Cout,)
    returns    : (N, Cout, Ho, Wo)
    """
    N, Cin, H, W = x_nchw.shape
    Cout, _, KH, KW = weight_oihw.shape
    Ho, Wo = H - KH + 1, W - KW + 1

    L = H * W
    Lout = _round_up(Ho * W, 128)                  # lane-dense output width (>=128, x128)
    d_max = (KH - 1) * W + (KW - 1)                # largest tap shift
    Lin = _round_up(max(L, d_max + Lout), 128)     # flat input length incl. zero pad

    # glue: free reshape to flat NCHW + zero pad of the flat (lane) axis.
    x_flat = x_nchw.reshape(N, Cin, L)
    if Lin > L:
        x_flat = jnp.pad(x_flat, ((0, 0), (0, 0), (0, Lin - L)))

    # glue: matmul-ready weight (Cout, KH*KW*Cin), contraction ordered (kh, kw, cin).
    w2d = jnp.transpose(weight_oihw, (0, 2, 3, 1)).reshape(Cout, KH * KW * Cin)
    b2d = bias.reshape(Cout, 1)

    kernel = functools.partial(_conv2d_kernel, W=W, Cin=Cin, KH=KH, KW=KW, Lout=Lout)

    out_flat = pl.pallas_call(
        kernel,
        out_shape=jax.ShapeDtypeStruct((N, Cout, Lout), x_nchw.dtype),
        grid=(N,),
        in_specs=[
            pl.BlockSpec((1, Cin, Lin), lambda n: (n, 0, 0)),
            pl.BlockSpec((Cout, KH * KW * Cin), lambda n: (0, 0)),
            pl.BlockSpec((Cout, 1), lambda n: (0, 0)),
        ],
        out_specs=pl.BlockSpec((1, Cout, Lout), lambda n: (n, 0, 0)),
        compiler_params=pltpu.CompilerParams(
            dimension_semantics=("parallel",)),   # v7x: one image per TensorCore
    )(x_flat, w2d, b2d)

    # glue: drop the W-padding / row-padding (valid output is wo < Wo, ho < Ho).
    out = out_flat[:, :, :Ho * W].reshape(N, Cout, Ho, W)[:, :, :, :Wo]
    return out


if __name__ == "__main__":
    # Small shapes consistent with FirstConvLayer(in_channels=4, out_channels=8, kernel_size=3)
    N, Cin, H, W = 2, 4, 16, 16
    Cout, K = 8, 3

    key = jax.random.PRNGKey(0)
    kx, kw, kb = jax.random.split(key, 3)

    x = jax.random.normal(kx, (N, Cin, H, W), dtype=jnp.float32)
    # Deterministic init mimicking PyTorch's uniform(-bound, bound), bound = 1/sqrt(Cin*K*K)
    fan_in = Cin * K * K
    bound = 1.0 / (fan_in ** 0.5)
    weight = jax.random.uniform(kw, (Cout, Cin, K, K), dtype=jnp.float32,
                                minval=-bound, maxval=bound)
    bias = jax.random.uniform(kb, (Cout,), dtype=jnp.float32,
                              minval=-bound, maxval=bound)

    y = first_conv_layer(x, weight, bias)
    y = jax.block_until_ready(y)

    # Sanity check against XLA's native convolution.
    y_ref = jax.lax.conv_general_dilated(
        x, weight, window_strides=(1, 1), padding="VALID",
        dimension_numbers=("NCHW", "OIHW", "NCHW"),
    ) + bias.reshape(1, Cout, 1, 1)
    assert y.shape == (N, Cout, H - K + 1, W - K + 1)
    assert jnp.allclose(y, y_ref, atol=1e-5, rtol=1e-5)

    print("KERNEL_OK")
</pallas_src>

<mosaic_0001>
module attributes {stable_mosaic.version = 11 : i64} {
  func.func @_conv2d_kernel(%arg0: i32, %arg1: memref<1x4x384xf32, #tpu.memory_space<vmem>>, %arg2: memref<8x36xf32, #tpu.memory_space<vmem>>, %arg3: memref<8x1xf32, #tpu.memory_space<vmem>>, %arg4: memref<1x8x256xf32, #tpu.memory_space<vmem>>) attributes {dimension_semantics = [#tpu.dimension_semantics<parallel>], iteration_bounds = array<i64: 2>, scalar_prefetch = 0 : i64, scratch_operands = 0 : i64, tpu.core_type = #tpu.core_type<tc>, window_params = [{transform_indices = @transform_0, window_bounds = array<i64: 1, 4, 384>}, {pipeline_mode = #tpu.pipeline_mode<synchronous>, transform_indices = @transform_1, window_bounds = array<i64: 8, 36>}, {pipeline_mode = #tpu.pipeline_mode<synchronous>, transform_indices = @transform_2, window_bounds = array<i64: 8, 1>}, {transform_indices = @transform_3, window_bounds = array<i64: 1, 8, 256>}]} {
    %c0 = arith.constant 0 : index
    %c0_0 = arith.constant 0 : index
    %c0_1 = arith.constant 0 : index
    %0 = vector.load %arg1[%c0, %c0_0, %c0_1] : memref<1x4x384xf32, #tpu.memory_space<vmem>>, vector<1x4x256xf32>
    %1 = vector.shape_cast %0 : vector<1x4x256xf32> to vector<4x256xf32>
    %c0_2 = arith.constant 0 : index
    %c0_3 = arith.constant 0 : index
    %c1 = arith.constant 1 : index
    %2 = vector.load %arg1[%c0_2, %c0_3, %c1] : memref<1x4x384xf32, #tpu.memory_space<vmem>>, vector<1x4x256xf32>
    %3 = vector.shape_cast %2 : vector<1x4x256xf32> to vector<4x256xf32>
    %c0_4 = arith.constant 0 : index
    %c0_5 = arith.constant 0 : index
    %c2 = arith.constant 2 : index
    %4 = vector.load %arg1[%c0_4, %c0_5, %c2] : memref<1x4x384xf32, #tpu.memory_space<vmem>>, vector<1x4x256xf32>
    %5 = vector.shape_cast %4 : vector<1x4x256xf32> to vector<4x256xf32>
    %c0_6 = arith.constant 0 : index
    %c0_7 = arith.constant 0 : index
    %c16 = arith.constant 16 : index
    %6 = vector.load %arg1[%c0_6, %c0_7, %c16] : memref<1x4x384xf32, #tpu.memory_space<vmem>>, vector<1x4x256xf32>
    %7 = vector.shape_cast %6 : vector<1x4x256xf32> to vector<4x256xf32>
    %c0_8 = arith.constant 0 : index
    %c0_9 = arith.constant 0 : index
    %c17 = arith.constant 17 : index
    %8 = vector.load %arg1[%c0_8, %c0_9, %c17] : memref<1x4x384xf32, #tpu.memory_space<vmem>>, vector<1x4x256xf32>
    %9 = vector.shape_cast %8 : vector<1x4x256xf32> to vector<4x256xf32>
    %c0_10 = arith.constant 0 : index
    %c0_11 = arith.constant 0 : index
    %c18 = arith.constant 18 : index
    %10 = vector.load %arg1[%c0_10, %c0_11, %c18] : memref<1x4x384xf32, #tpu.memory_space<vmem>>, vector<1x4x256xf32>
    %11 = vector.shape_cast %10 : vector<1x4x256xf32> to vector<4x256xf32>
    %c0_12 = arith.constant 0 : index
    %c0_13 = arith.constant 0 : index
    %c32 = arith.constant 32 : index
    %12 = vector.load %arg1[%c0_12, %c0_13, %c32] : memref<1x4x384xf32, #tpu.memory_space<vmem>>, vector<1x4x256xf32>
    %13 = vector.shape_cast %12 : vector<1x4x256xf32> to vector<4x256xf32>
    %c0_14 = arith.constant 0 : index
    %c0_15 = arith.constant 0 : index
    %c33 = arith.constant 33 : index
    %14 = vector.load %arg1[%c0_14, %c0_15, %c33] : memref<1x4x384xf32, #tpu.memory_space<vmem>>, vector<1x4x256xf32>
    %15 = vector.shape_cast %14 : vector<1x4x256xf32> to vector<4x256xf32>
    %c0_16 = arith.constant 0 : index
    %c0_17 = arith.constant 0 : index
    %c34 = arith.constant 34 : index
    %16 = vector.load %arg1[%c0_16, %c0_17, %c34] : memref<1x4x384xf32, #tpu.memory_space<vmem>>, vector<1x4x256xf32>
    %17 = vector.shape_cast %16 : vector<1x4x256xf32> to vector<4x256xf32>
    %18 = tpu.concatenate %1, %3, %5, %7, %9, %11, %13, %15, %17 in 0 : vector<4x256xf32>, vector<4x256xf32>, vector<4x256xf32>, vector<4x256xf32>, vector<4x256xf32>, vector<4x256xf32>, vector<4x256xf32>, vector<4x256xf32>, vector<4x256xf32> -> vector<36x256xf32>
    %c0_18 = arith.constant 0 : index
    %c0_19 = arith.constant 0 : index
    %19 = vector.load %arg2[%c0_18, %c0_19] : memref<8x36xf32, #tpu.memory_space<vmem>>, vector<8x36xf32>
    %cst = arith.constant dense<0.000000e+00> : vector<8x256xf32>
    %20 = tpu.matmul %19, %18, %cst {dimension_numbers = #tpu.dot_dimension_numbers<[1], [0], [0], [1], [0, 0, 1, 1], [], []>} : vector<8x36xf32>, vector<36x256xf32>, vector<8x256xf32> -> vector<8x256xf32>
    %c0_20 = arith.constant 0 : index
    %c0_21 = arith.constant 0 : index
    %21 = vector.load %arg3[%c0_20, %c0_21] : memref<8x1xf32, #tpu.memory_space<vmem>>, vector<8x1xf32>
    %22 = vector.broadcast %21 : vector<8x1xf32> to vector<8x256xf32>
    %23 = arith.addf %20, %22 : vector<8x256xf32>
    %c0_22 = arith.constant 0 : index
    %c0_23 = arith.constant 0 : index
    %c0_24 = arith.constant 0 : index
    %24 = vector.load %arg4[%c0_22, %c0_23, %c0_24] : memref<1x8x256xf32, #tpu.memory_space<vmem>>, vector<1x8x256xf32>
    %25 = vector.shape_cast %24 : vector<1x8x256xf32> to vector<8x256xf32>
    %26 = vector.shape_cast %23 : vector<8x256xf32> to vector<1x8x256xf32>
    tpu.vector_store %arg4[%c0_22, %c0_23, %c0_24], %26 {strides = array<i32>} : memref<1x8x256xf32, #tpu.memory_space<vmem>>, vector<1x8x256xf32>,
    return
  }
  func.func @transform_0(%arg0: i32) -> (i32, i32, i32) {
    %c0_i32 = arith.constant 0 : i32
    %c0_i32_0 = arith.constant 0 : i32
    %c0_i32_1 = arith.constant 0 : i32
    return %arg0, %c0_i32, %c0_i32_0 : i32, i32, i32
  }
  func.func @transform_1(%arg0: i32) -> (i32, i32) {
    %c0_i32 = arith.constant 0 : i32
    %c0_i32_0 = arith.constant 0 : i32
    %c0_i32_1 = arith.constant 0 : i32
    return %c0_i32, %c0_i32_0 : i32, i32
  }
  func.func @transform_2(%arg0: i32) -> (i32, i32) {
    %c0_i32 = arith.constant 0 : i32
    %c0_i32_0 = arith.constant 0 : i32
    %c0_i32_1 = arith.constant 0 : i32
    return %c0_i32, %c0_i32_0 : i32, i32
  }
  func.func @transform_3(%arg0: i32) -> (i32, i32, i32) {
    %c0_i32 = arith.constant 0 : i32
    %c0_i32_0 = arith.constant 0 : i32
    %c0_i32_1 = arith.constant 0 : i32
    return %arg0, %c0_i32, %c0_i32_0 : i32, i32, i32
  }
}

</mosaic_0001>

<bundles_post_ra>
// kernel: tpu_custom_call.1
= control target key start
LH: loop header
LB: loop body
LE: loop exit
PB: predicated region body
PF: predicated region fallthrough
CT: control target
= control target key end

     0   :  { %8 = vsyncpa [#allocation3], 0  ;;  %s908_s0 = inlined_call_operand.hbm [shape: f32[2,4,384], index: 0, kind: input, shape index: {}]   ;;  %s909_s1 = inlined_call_operand.vmem [shape: f32[8,36], index: 1, kind: input, shape index: {}]   ;;  %s910_s2 = inlined_call_operand.vmem [shape: f32[8,1], index: 2, kind: input, shape index: {}]   ;;  %s911_s3 = inlined_call_operand.hbm [shape: f32[2,8,256], index: 3, kind: output, shape index: {}]  }
   0x1   :  { %10 = vsyncpa [#allocation3 + $0x1], 0 }
   0x2   :  { %11 = vsyncpa [#allocation4], 0 }
   0x3   :  { %13 = vsyncpa [#allocation4 + $0x1], 0  ;;  %s718_s12 = smov 0   ;;  %s720_s13 = smov 0  }
   0x4   :  { %s722_s14 = smov 0   ;;  %s724_s15 = smov 0  }
   0x5 LB: > { %s739_s16 = sadd.s32 4294967295, %s684_s15   ;;  %s466_s17 = sadd.s32 4294967294, %s684_s15   ;;  %s684_s15 = sphi %s724_s15, %s925_s15   ;;  %s680_s14 = sphi %s722_s14, %s924_s14   ;;  %s676_s13 = sphi %s720_s13, %s923_s13   ;;  %s672_s12 = sphi %s718_s12, %s922_s12  }
   0x6   : > { %s743_s18 = sadd.s32 1, %s684_s15   ;;  %s26_s19 = sadd.s32 1, %s680_s14 }
   0x7   : > { %s23_s20 = ssub.s32 %s684_s15, %s743_s18  ;;  %p33_p0 = scmp.ne.s32.totalorder %s680_s14, %s676_s13 }
   0x8   : > { %p24_p1 = scmp.eq.s32.totalorder %s23_s20, 0  ;;  %p34_p2 = scmp.eq.s32.totalorder %s684_s15, 0 }
   0x9   : > { %p39_p3 = scmp.ne.s32.totalorder %s676_s13, %s672_s12  ;;  %p40_p4 = scmp.eq.s32.totalorder %s739_s16, 0 }
   0xa   : > { %s755_s21 = scalar_select %p24_p1, %s680_s14, %s26_s19  }
   0xb   : > { %p35_p5 = por %p34_p2, %p33_p0  ;;  %p757_p6 = por %p40_p4, %p39_p3 }
   0xc   : > { %p105_p7 = scmp.eq.s32.totalorder %s739_s16, 1  ;;  %p111_p8 = scmp.eq.s32.totalorder %s466_s17, 1 }
   0xd   : > { %p504_p10 = scmp.lt.s32.totalorder %s684_s15, 2  ;;  %s137_s25 = sand.u32 1, %s680_s14  }
   0xe   : > { %p764_p11 = por %p105_p7, %p33_p0  ;;  %p768_p12 = por %p111_p8, %p39_p3 }
   0xf   : > { %s490_s26 = smul.u32 192, %s684_s15  ;;  %p779_p13 = pnand %p504_p10, %p35_p5 }
  0x10   : > { %s914_s23 = scalar_select %p764_p11, 1, 0 }
  0x11   : > { %s915_s24 = scalar_select %p768_p12, 1, 0 }
  0x12   : > { %s489_s27 = smul.u32 12, %s137_s25  ;;  %s777_s30 = scalar_lea.hbm %s908_s0, %s490_s26 }
  0x13   : > { %s138_s7 = scalar_lea.sflag [#allocation3], %s137_s25  ;;  %s588_s8 = scalar_lea.hbm %s777_s30, 192 }
  0x14   : > { %s141_s5 = scalar_lea.vmem [#allocation2], %s489_s27  ;;  %p589_p2 = scmp.ne.s32.totalorder %s777_s30, %s588_s8 }
  0x15   : > { %s149_s6 = sshll.u32 %s141_s5, 4  ;;  %p590_p3 = pneg %p779_p13  ;;  %s784_s6 = int_to_ptr.vmem [resolvable:$true] %s149_s6 }
  0x16   : > { %s593_s11 = scalar_lea.hbm %s908_s0, 384  ;;  %p594_p7 = scmp.lt.u32.totalorder %s777_s30, %s908_s0 }
  0x17   : > { %p591_p4 = pnand %p590_p3, %p589_p2  ;;  %p595_p8 = scmp.lt.u32.totalorder %s593_s11, %s588_s8 }
  0x18   : > { %p597_p9 = scmp.lt.u32.totalorder %s588_s8, %s777_s30 }
  0x19   : > { %p592_p5 = pneg %p591_p4  ;;  %p596_p10 = por %p595_p8, %p594_p7 }
  0x1b   : > { %p598_p0 = por %p597_p9, %p596_p10 }
  0x1d   : > { %p599_p1 = pnand %p598_p0, %p592_p5 }
  0x1f   : > { %602 = shalt.err (!%p599_p1)
}
  0x20   : > { %s603_s20 = scalar_lea.vmem %s784_s6, 192  ;;  %s686_s25 = smov [#allocation2]  }
  0x21   : > { %p604_p2 = scmp.ne.s32.totalorder %s784_s6, %s603_s20  ;;  %s608_s26 = sshll.u32 %s686_s25, 4  ;;  %s609_s26 = int_to_ptr.vmem [resolvable:$false] %s608_s26 }
  0x22   : > { %s610_s27 = scalar_lea.vmem %s609_s26, 384  ;;  %p611_p11 = scmp.lt.s32.totalorder %s784_s6, %s609_s26 }
  0x23   : > { %p606_p4 = pnand %p604_p2, %p590_p3  ;;  %p612_p7 = scmp.lt.s32.totalorder %s610_s27, %s603_s20 }
  0x25   : > { %p607_p12 = pneg %p606_p4  ;;  %p613_p8 = por %p612_p7, %p611_p11 }
  0x27   : > { %p614_p9 = pnand %p613_p8, %p607_p12 }
  0x29   : > { %617 = shalt.err (!%p614_p9)
}
  0x2a   : > { %499 = dma.hbm_to_vmem [thread:$0]  (!%p779_p13), %s777_s30, 192, %s784_s6, %s138_s7  }
  0x2b   : > { %p917_p0 = scmp.lt.s32.totalorder %s684_s15, 3  ;;  %p918_p1 = scmp.ge.s32.totalorder %s684_s15, 1 }
  0x2d   : > { %p155_p3 = pnand %p918_p1, %p917_p0 }
  0x2e   : > { %s817_s28 = sand.u32 (!%p155_p3), 1, %s676_s13  }
  0x2f   : > { %158 = sbr.rel (%p155_p3) target bundleno = 437 (0x1b5), region = 32  ;;  %s161_s5 = scalar_lea.sflag (!%p155_p3), [#allocation3], %s817_s28 }
  0x30   : > { %s491_s29 = smul.u32 (!%p155_p3), 12, %s817_s28 }
  0x32   : > { %s164_s8 = scalar_lea.vmem (!%p155_p3), [#allocation2], %s491_s29 }
  0x36   : > { %663 = dma.done.wait (%p757_p6), %s161_s5, 192  }
  0x37   : > { %665 = vsyncadd (%p757_p6), %s161_s5, 4294967104  ;;  %v825_v0 = vld [vmem:[%s164_s8] sm:$0xff]  ;;  %v189_v1 = vld [vmem:[%s164_s8 + $0x8] sm:$0xf]  ;;  %s687_s30 = smov 126   ;;  %s688_s4 = smov 112  }
  0x38   : > { %209 = vrot.lane.b32.xlu0 %v825_v0, %s687_s30  ;;  %v196_v2 = vcombine.low %v189_v1, %v189_v1  ;;  %v208_v3 = vcombine.high %v825_v0, %v825_v0  ;;  %s689_s6 = smov 127   ;;  %v195_v6 = vcombine.low %v825_v0, %v825_v0  ;;  %s690_s22 = smov 111   ;;  %v694_v7 = vmov 0.0   ;;  %v294_v9 = vld [vmem:[%s910_s2] sm:$0xff] }
  0x39   : > { %s691_s7 = smov 96   ;;  %s692_s9 = smov 110   ;;  %372 = vmatprep.mubr.f32.mxu0 %v694_v7  ;;  %v695_v8 = vmov 0   ;;  %vm203_vm0 = vcmask 1039360   ;;  %vm284_vm1 = vcmask 1043456   ;;  %vm226_vm2 = vcmask 916480  }
  0x3a   : > { %v558_v4 = vpack.i.bf16 %v196_v2, %v825_v0  ;;  %v553_v5 = vpack.i.bf16 %v189_v1, %v208_v3  ;;  %s693_s10 = smov 95   ;;  %583 = vset.pattern.permute.xlu1 %v695_v8  ;;  %584 = vset.pattern.permute.xlu0 %v695_v8  ;;  %s696_s11 = smov 94   ;;  %vm215_vm3 = vcmask 1031168   ;;  %vm237_vm4 = vcmask 908288  }
  0x3b   : > { %vm259_vm5 = vcmask 785408   ;;  %vm248_vm6 = vcmask 900096   ;;  %vm270_vm7 = vcmask 777216   ;;  %vm281_vm8 = vcmask 769024   ;;  %s471_s26 = sshll.u32 %s817_s28, 4  ;;  %s480_s27 = sshll.u32 %s739_s16, 8 }
  0x3c   : > { %559 = vrot.lane.b32.xlu1 %v558_v4, %s688_s4  ;;  %549 = vrot.lane.b32.xlu0 %v558_v4, %s689_s6  ;;  %vm300_vm9 = vcmask 293888   ;;  %s186_s29 = scalar_lea.vmem [#allocation5], %s471_s26  ;;  %p919_p11 = scmp.ne.s32.totalorder %s914_s23, 0 }
  0x3d   : > { %s396_s5 = sshll.u32 %s186_s29, 4  ;;  %s866_s5 = int_to_ptr.vmem [resolvable:$true] %s396_s5 }
  0x3e   : > { %s618_s16 = scalar_lea.vmem %s866_s5, 256 }
  0x3f   : > { %p619_p6 = scmp.ne.s32.totalorder %s866_s5, %s618_s16 }
  0x40   : > { %554 = vrot.lane.b32.xlu0 %v553_v5, %s687_s30  ;;  %197 = vrot.lane.b32.xlu1 %v195_v6, %s689_s6  ;;  %s382_s6 = scalar_lea.sflag [#allocation4], %s817_s28 }
  0x41   : > { %p620_p12 = pnand %p619_p6, %p919_p11 }
  0x43   : > { %p621_p13 = pneg %p620_p12 }
  0x44   : > { %564 = vrot.lane.b32.xlu0 %v553_v5, %s690_s22  ;;  %220 = vrot.lane.b32.xlu1 %v195_v6, %s688_s4  ;;  %s864_s4 = scalar_lea.hbm %s911_s3, %s480_s27 }
  0x48   : > { %574 = vrot.lane.b32.xlu0 %v553_v5, %s691_s7  ;;  %569 = vrot.lane.b32.xlu1 %v558_v4, %s692_s9 }
  0x4c   : > { %231 = vrot.lane.b32.xlu0 %v825_v0, %s690_s22  ;;  %579 = vrot.lane.b32.xlu1 %v558_v4, %s693_s10  ;;  %v293_v4 = vld [vmem:[%s909_s1] sm:$0xff]  ;;  %s697_s22 = smov [#allocation5]  }
  0x50   : > { %253 = vrot.lane.b32.xlu0 %v825_v0, %s691_s7  ;;  %242 = vrot.lane.b32.xlu1 %v195_v6, %s692_s9  ;;  %s622_s7 = sshll.u32 %s697_s22, 4  ;;  %s623_s7 = int_to_ptr.vmem [resolvable:$false] %s622_s7 }
  0x51   : > { %s624_s9 = scalar_lea.vmem %s623_s7, 512  ;;  %p625_p5 = scmp.lt.s32.totalorder %s866_s5, %s623_s7 }
  0x52   : > { %p626_p10 = scmp.lt.s32.totalorder %s624_s9, %s618_s16 }
  0x54   : > { %277 = vrot.lane.b32.xlu0 %v208_v3, %s696_s11  ;;  %264 = vrot.lane.b32.xlu1 %v195_v6, %s693_s10  ;;  %p627_p2 = por %p626_p10, %p625_p5 }
  0x56   : > { %p628_p4 = pnand %p627_p2, %p621_p13 }
  0x58   : > { %275 = vrot.lane.b32.xlu0 %v825_v0, %s696_s11  ;;  %279 = vrot.lane.b32.xlu1 %v189_v1, %s696_s11 }
  0x5c   : > { %297 = vperm.xlu1 %583, %v294_v9  }
  0xaa   : > { %v210_v10 = vpop.permute.xlu0 %209 }
  0xae   : > { %v560_v11 = vpop.permute.xlu1 %559  ;;  %v550_v12 = vpop.permute.xlu0 %549 }
  0xaf   : > { %v552_v13 = vunpack.i.h.bf16 %v550_v12  ;;  %v551_v14 = vunpack.i.l.bf16 %v550_v12  ;;  %v562_v15 = vunpack.i.h.bf16 %v560_v11  ;;  %v561_v16 = vunpack.i.l.bf16 %v560_v11 }
  0xb1   : > { %v205_v17 = vsel %vm203_vm0, %v551_v14, %v552_v13  ;;  %v228_v25 = vsel %vm226_vm2, %v561_v16, %v562_v15 }
  0xb2   : > { %v555_v18 = vpop.permute.xlu0 %554  ;;  %v198_v19 = vpop.permute.xlu1 %197  ;;  %v286_v22 = vsel %vm284_vm1, %v208_v3, %v205_v17 }
  0xb3   : > { %v557_v20 = vunpack.i.h.bf16 %v555_v18  ;;  %v556_v21 = vunpack.i.l.bf16 %v555_v18  ;;  %v204_v23 = vsel %vm203_vm0, %v198_v19, %v551_v14 }
  0xb4   : > { %v285_v32 = vsel %vm284_vm1, %v825_v0, %v204_v23 }
  0xb5   : > { %v217_v24 = vsel %vm215_vm3, %v556_v21, %v557_v20  ;;  %v216_v31 = vsel %vm215_vm3, %v210_v10, %v556_v21 }
  0xb6   : > { %v565_v26 = vpop.permute.xlu0 %564  ;;  %v221_v27 = vpop.permute.xlu1 %220  ;;  %v288_v28 = vsel %vm284_vm1, %v217_v24, %v228_v25 }
  0xb7   : > { %v227_v29 = vsel %vm226_vm2, %v221_v27, %v561_v16  ;;  %v481_v30 = vpack.c.bf16 %v288_v28, %v286_v22  ;;  %v567_v35 = vunpack.i.h.bf16 %v565_v26  ;;  %v566_v36 = vunpack.i.l.bf16 %v565_v26 }
  0xb8   : > { %v287_v33 = vsel %vm284_vm1, %v216_v31, %v227_v29 }
  0xb9   : > { %482 = vmatprep.subr.bf16.mxu0 %v481_v30  ;;  %v483_v34 = vpack.c.bf16 %v287_v33, %v285_v32  ;;  %v239_v44 = vsel %vm237_vm4, %v566_v36, %v567_v35 }
  0xba   : > { %v575_v37 = vpop.permute.xlu0 %574  ;;  %v570_v38 = vpop.permute.xlu1 %569 }
  0xbb   : > { %v577_v39 = vunpack.i.h.bf16 %v575_v37  ;;  %v576_v40 = vunpack.i.l.bf16 %v575_v37  ;;  %v572_v41 = vunpack.i.h.bf16 %v570_v38  ;;  %v571_v42 = vunpack.i.l.bf16 %v570_v38  ;;  %484 = vmatpush1.bf16.msra.mxu0 %v483_v34 }
  0xbd   : > { %v261_v48 = vsel %vm259_vm5, %v576_v40, %v577_v39  ;;  %v250_v49 = vsel %vm248_vm6, %v571_v42, %v572_v41 }
  0xbe   : > { %v232_v43 = vpop.permute.xlu0 %231  ;;  %v580_v45 = vpop.permute.xlu1 %579  ;;  %v290_v53 = vsel %vm284_vm1, %v239_v44, %v250_v49 }
  0xbf   : > { %v582_v46 = vunpack.i.h.bf16 %v580_v45  ;;  %v581_v47 = vunpack.i.l.bf16 %v580_v45  ;;  %v238_v59 = vsel %vm237_vm4, %v232_v43, %v566_v36 }
  0xc1   : > { %v272_v50 = vsel %vm270_vm7, %v581_v47, %v582_v46 }
  0xc2   : > { %v254_v51 = vpop.permute.xlu0 %253  ;;  %v243_v52 = vpop.permute.xlu1 %242  ;;  %v292_v54 = vsel %vm284_vm1, %v261_v48, %v272_v50 }
  0xc3   : > { %v485_v55 = vpack.c.bf16 %v292_v54, %v290_v53  ;;  %v249_v56 = vsel %vm248_vm6, %v243_v52, %v571_v42  ;;  %v260_v60 = vsel %vm259_vm5, %v254_v51, %v576_v40 }
  0xc4   : > { %v289_v62 = vsel %vm284_vm1, %v238_v59, %v249_v56 }
  0xc5   : > { %486 = vmatprep.subr.bf16.mxu0 %v485_v55 }
  0xc6   : > { %v278_v57 = vpop.permute.xlu0 %277  ;;  %v265_v58 = vpop.permute.xlu1 %264 }
  0xc7   : > { %v271_v61 = vsel %vm270_vm7, %v265_v58, %v581_v47 }
  0xc8   : > { %v291_v63 = vsel %vm284_vm1, %v260_v60, %v271_v61 }
  0xc9   : > { %v487_v0 = vpack.c.bf16 %v291_v63, %v289_v62 }
  0xca   : > { %v280_v1 = vpop.permute.xlu1 %279  ;;  %v276_v2 = vpop.permute.xlu0 %275 }
  0xcb   : > { %v283_v3 = vsel %vm281_vm8, %v278_v57, %v280_v1  ;;  %488 = vmatpush1.bf16.msra.mxu0 %v487_v0  ;;  %v282_v5 = vsel %vm281_vm8, %v276_v2, %v278_v57 }
  0xcc   : > { %472 = vmatprep.subr.msk.mxu0 %vm284_vm1, %v283_v3 }
  0xcf   : > { %473 = vmatpush1.msk.msra.mxu0 %vm284_vm1, %v282_v5 }
  0xd0   : > { %474 = vmatmul.mubr.msk.f32.vlgmr.msra.gmra.mrb[0].mxu0 %vm300_vm9, %v293_v4 }
  0xdb   : > { %v298_v6 = vpop.permute.xlu1 %297 }
 0x1a3   : > { %v374_v7 = vpop.f32.mrb[0].mxu0 }
 0x1a4   : > { %v375_v8 = vadd.f32 %v374_v7, %v298_v6  ;;  %v376_v9 = vpop.f32.mrb[1].mxu0 }
 0x1a5   : > { %v377_v10 = vadd.f32 %v376_v9, %v298_v6 }
 0x1a6   : > { %379 = vst [vmem:[%s186_s29] sm:$0xff] %v375_v8 }
 0x1a7   : > { %380 = vst [vmem:[%s186_s29 + $0x8] sm:$0xff] %v377_v10 }
 0x1a8   : > { %631 = shalt.err (!%p628_p4)
}
 0x1a9   : > { %s632_s28 = scalar_lea.hbm %s864_s4, 256  ;;  %s636_s17 = scalar_lea.hbm %s911_s3, 512 }
 0x1aa   : > { %p633_p7 = scmp.ne.s32.totalorder %s864_s4, %s632_s28  ;;  %p637_p0 = scmp.lt.u32.totalorder %s864_s4, %s911_s3 }
 0x1ab   : > { %p638_p1 = scmp.lt.u32.totalorder %s636_s17, %s632_s28  ;;  %p640_p6 = scmp.lt.u32.totalorder %s632_s28, %s864_s4 }
 0x1ac   : > { %p634_p8 = pnand %p633_p7, %p919_p11 }
 0x1ad   : > { %p639_p3 = por %p638_p1, %p637_p0 }
 0x1ae   : > { %p635_p9 = pneg %p634_p8 }
 0x1af   : > { %p641_p12 = por %p640_p6, %p639_p3 }
 0x1b1   : > { %p642_p13 = pnand %p641_p12, %p635_p9 }
 0x1b3   : > { %645 = shalt.err (!%p642_p13)
}
 0x1b4   : > { %494 = dma.vmem_to_hbm [thread:$0]  (%p919_p11), %s866_s5, 256, %s864_s4, %s382_s6  }
 0x1b5 PF: > { %s408_s25 = sand.u32 1, %s672_s12   ;;  %p920_p5 = scmp.ne.s32.totalorder %s915_s24, 0 }
 0x1b6   : > { %p921_p10 = scmp.ge.s32.totalorder %s684_s15, 2  ;;  %s409_s26 = scalar_lea.sflag [#allocation4], %s408_s25 }
 0x1b8   : > { %p501_p2 = pnand %p921_p10, %p920_p5 }
 0x1ba   : > { %667 = dma.done.wait (!%p501_p2), %s409_s26, 256  }
 0x1bb   : > { %669 = vsyncadd (!%p501_p2), %s409_s26, 4294967040  ;;  %p16_p4 = scmp.ge.s32.totalorder %s743_s18, 4   ;;  %s922_s12 = smov %s676_s13 }
 0x1bc   : > { %s923_s13 = smov %s680_s14  ;;  %s924_s14 = smov %s755_s21 }
 0x1bd   : > { %s925_s15 = smov %s743_s18  ;;  %18 = sbr.rel (!%p16_p4) target bundleno = 5 (0x5), region = 77 }
 0x1c4   :  { %414 = vsyncpa [#allocation3], 1 }
 0x1c5   :  { %416 = vsyncpa [#allocation3 + $0x1], 1 }
 0x1c6   :  { %417 = vsyncpa [#allocation4], 1 }
 0x1c7   :  { %419 = vsyncpa [#allocation4 + $0x1], 1 }

</bundles_post_ra>
